<compile_context>
chip_gen: v7x
topology: tpu7x:2x2x1
jax: 0.10.0
libtpu: 0.0.40
codegen_flags: <defaults>
</compile_context>

<pallas_src>
import functools

import jax
import jax.numpy as jnp
from jax.experimental import pallas as pl
from jax.experimental.pallas import tpu as pltpu


def _rope_kernel(q_ref, k_ref, cos_ref, sin_ref, qo_ref, ko_ref, *, half):
    """Apply rotary embedding to one (TS, D) tile of Q and K.

    sin_ref already carries the rotate_half sign: sin_signed = cat(-sin, sin),
    so rot(x) here is the unsigned half-swap cat(x2, x1).
    """
    cos = cos_ref[...]          # (TS, D)
    sin_s = sin_ref[...]        # (TS, D)  sign-folded sin
    q = q_ref[...]              # (TS, D)  (leading BH dim squeezed away)
    k = k_ref[...]              # (TS, D)

    def half_swap(x):
        # cat(x2, x1) along the channel axis (sign lives in sin_s).
        return jnp.concatenate([x[:, half:], x[:, :half]], axis=-1)

    qo_ref[...] = q * cos + half_swap(q) * sin_s
    ko_ref[...] = k * cos + half_swap(k) * sin_s


def _rope_tables(seq_len, key_size, dtype, rescaling_factor=None):
    """Pure-JAX glue: cos / sign-folded-sin tables, matching the PyTorch module.

    Returns (cos, sin_signed), each (S, D) in `dtype`, where
      cos        = cat(cos(freqs), cos(freqs))
      sin_signed = cat(-sin(freqs), sin(freqs))
    """
    upper_freq = 10000.0
    if rescaling_factor is None:
        base = upper_freq
    else:
        base = upper_freq * rescaling_factor ** (key_size / (key_size - 2))
    inv_freq = 1.0 / (base ** (jnp.arange(0, key_size, 2, dtype=jnp.float32) / key_size))
    t = jnp.arange(seq_len, dtype=jnp.float32)
    freqs = jnp.einsum("i,j->ij", t, inv_freq)                      # (S, D/2)
    # Match torch: cast the angle table to the head dtype, THEN take cos/sin.
    emb_half = freqs.astype(dtype)                                  # (S, D/2)
    cos_h = jnp.cos(emb_half)
    sin_h = jnp.sin(emb_half)
    cos = jnp.concatenate([cos_h, cos_h], axis=-1)                  # (S, D)
    sin_signed = jnp.concatenate([-sin_h, sin_h], axis=-1)          # (S, D)
    return cos, sin_signed


def _choose_seq_tile(seq_len):
    """Pick a sequence tile: full S if small, else a multiple-of-8 divisor in the
    256-512 row sweet spot (measured ~85% of HBM roofline)."""
    if seq_len <= 512:
        return seq_len
    for ts in (512, 384, 256, 128, 64, 32, 16, 8):
        if seq_len % ts == 0:
            return ts
    return seq_len  # ragged S: fall back to one full-sequence block


def rotary_embedding(query_heads, key_heads, *, rescaling_factor=None, seq_tile=None):
    """query_heads, key_heads: (B, H, S, D).  Returns rotated (q, k), same shapes/dtype."""
    B, H, S, D = query_heads.shape
    assert key_heads.shape == query_heads.shape, "query/key head shapes must match"
    assert key_heads.dtype == query_heads.dtype, "query/key dtypes must match"
    assert D % 2 == 0, "key_size must be even for RoPE"

    dtype = query_heads.dtype
    cos, sin_signed = _rope_tables(S, D, dtype, rescaling_factor)    # (S, D) each

    BH = B * H
    q = query_heads.reshape(BH, S, D)
    k = key_heads.reshape(BH, S, D)

    TS = seq_tile if seq_tile is not None else _choose_seq_tile(S)
    assert S % TS == 0
    grid = (S // TS, BH)   # S tiles outer, BH inner -> cos/sin DMA'd once per S tile

    # Q/K blocks: squeezed BH dim -> kernel sees (TS, D).
    qk_spec = pl.BlockSpec((pl.Squeezed(), TS, D), lambda s, bh: (bh, s, 0))
    # cos/sin blocks depend only on the sequence-tile index (no re-DMA across bh).
    tab_spec = pl.BlockSpec((TS, D), lambda s, bh: (s, 0))

    itemsize = jnp.dtype(dtype).itemsize
    cost = pl.CostEstimate(
        flops=6 * BH * S * D,                                # 2 tensors * (2 mul + 1 add) / elem
        transcendentals=0,                                    # sin/cos precomputed outside
        bytes_accessed=(4 * BH * S * D + 2 * S * D) * itemsize,
    )

    kernel = functools.partial(_rope_kernel, half=D // 2)

    out_q, out_k = pl.pallas_call(
        kernel,
        out_shape=(
            jax.ShapeDtypeStruct((BH, S, D), dtype),
            jax.ShapeDtypeStruct((BH, S, D), dtype),
        ),
        grid_spec=pltpu.PrefetchScalarGridSpec(
            num_scalar_prefetch=0,
            grid=grid,
            in_specs=[qk_spec, qk_spec, tab_spec, tab_spec],
            out_specs=[qk_spec, qk_spec],
        ),
        compiler_params=pltpu.CompilerParams(
            # Fully independent blocks, no accumulator: both axes parallel so the
            # grid can be sharded across both TensorCores on v7x.
            dimension_semantics=("parallel", "parallel"),
            vmem_limit_bytes=32 * 1024 * 1024,
        ),
        cost_estimate=cost,
    )(q, k, cos, sin_signed)

    return out_q.reshape(B, H, S, D), out_k.reshape(B, H, S, D)


if __name__ == "__main__":
    # Small shapes consistent with the module: (batch, heads, seq, key_size).
    batch, heads, seq_len, key_size = 2, 4, 8, 32

    key = jax.random.PRNGKey(0)
    kq, kk = jax.random.split(key)
    q = jax.random.normal(kq, (batch, heads, seq_len, key_size), dtype=jnp.float32)
    k = jax.random.normal(kk, (batch, heads, seq_len, key_size), dtype=jnp.float32)

    q_out, k_out = rotary_embedding(q, k)
    q_out = jax.block_until_ready(q_out)
    k_out = jax.block_until_ready(k_out)

    # Pure-JAX reference (mirrors the PyTorch module exactly, standard sign convention).
    upper_freq = 10000.0
    inv_freq = 1.0 / (upper_freq ** (jnp.arange(0, key_size, 2, dtype=jnp.float32) / key_size))
    t = jnp.arange(seq_len, dtype=jnp.float32)
    freqs = jnp.einsum("i,j->ij", t, inv_freq)
    emb = jnp.concatenate([freqs, freqs], axis=-1).astype(q.dtype)
    cos_ref_tab, sin_ref_tab = jnp.cos(emb), jnp.sin(emb)

    def ref_apply(x):
        half = key_size // 2
        x1, x2 = x[..., :half], x[..., half:]
        x_rot = jnp.concatenate([-x2, x1], axis=-1)
        return x * cos_ref_tab[None, None] + x_rot * sin_ref_tab[None, None]

    assert jnp.allclose(q_out, ref_apply(q), atol=1e-5), "query mismatch vs reference"
    assert jnp.allclose(k_out, ref_apply(k), atol=1e-5), "key mismatch vs reference"

    print("KERNEL_OK")
</pallas_src>

<mosaic_0001>
module attributes {stable_mosaic.version = 11 : i64} {
  func.func @_rope_kernel(%arg0: i32, %arg1: i32, %arg2: memref<1x8x32xf32, #tpu.memory_space<vmem>>, %arg3: memref<1x8x32xf32, #tpu.memory_space<vmem>>, %arg4: memref<8x32xf32, #tpu.memory_space<vmem>>, %arg5: memref<8x32xf32, #tpu.memory_space<vmem>>, %arg6: memref<1x8x32xf32, #tpu.memory_space<vmem>>, %arg7: memref<1x8x32xf32, #tpu.memory_space<vmem>>) attributes {dimension_semantics = [#tpu.dimension_semantics<parallel>, #tpu.dimension_semantics<parallel>], iteration_bounds = array<i64: 1, 8>, scalar_prefetch = 0 : i64, scratch_operands = 0 : i64, tpu.core_type = #tpu.core_type<tc>, window_params = [{transform_indices = @transform_0, window_bounds = array<i64: 1, 8, 32>}, {transform_indices = @transform_1, window_bounds = array<i64: 1, 8, 32>}, {transform_indices = @transform_2, window_bounds = array<i64: 8, 32>}, {transform_indices = @transform_3, window_bounds = array<i64: 8, 32>}, {transform_indices = @transform_4, window_bounds = array<i64: 1, 8, 32>}, {transform_indices = @transform_5, window_bounds = array<i64: 1, 8, 32>}]} {
    %c0 = arith.constant 0 : index
    %c0_0 = arith.constant 0 : index
    %0 = vector.load %arg4[%c0, %c0_0] : memref<8x32xf32, #tpu.memory_space<vmem>>, vector<8x32xf32>
    %c0_1 = arith.constant 0 : index
    %c0_2 = arith.constant 0 : index
    %1 = vector.load %arg5[%c0_1, %c0_2] : memref<8x32xf32, #tpu.memory_space<vmem>>, vector<8x32xf32>
    %c0_3 = arith.constant 0 : index
    %c0_4 = arith.constant 0 : index
    %c0_5 = arith.constant 0 : index
    %2 = vector.load %arg2[%c0_3, %c0_4, %c0_5] : memref<1x8x32xf32, #tpu.memory_space<vmem>>, vector<1x8x32xf32>
    %3 = vector.shape_cast %2 : vector<1x8x32xf32> to vector<8x32xf32>
    %c0_6 = arith.constant 0 : index
    %c0_7 = arith.constant 0 : index
    %c0_8 = arith.constant 0 : index
    %4 = vector.load %arg3[%c0_6, %c0_7, %c0_8] : memref<1x8x32xf32, #tpu.memory_space<vmem>>, vector<1x8x32xf32>
    %5 = vector.shape_cast %4 : vector<1x8x32xf32> to vector<8x32xf32>
    %6 = arith.mulf %3, %0 : vector<8x32xf32>
    %7 = vector.extract_strided_slice %3 {offsets = [0, 16], sizes = [8, 16], strides = [1, 1]} : vector<8x32xf32> to vector<8x16xf32>
    %8 = vector.extract_strided_slice %3 {offsets = [0, 0], sizes = [8, 16], strides = [1, 1]} : vector<8x32xf32> to vector<8x16xf32>
    %9 = tpu.concatenate %7, %8 in 1 : vector<8x16xf32>, vector<8x16xf32> -> vector<8x32xf32>
    %10 = arith.mulf %9, %1 : vector<8x32xf32>
    %11 = arith.addf %6, %10 : vector<8x32xf32>
    %c0_9 = arith.constant 0 : index
    %c0_10 = arith.constant 0 : index
    %c0_11 = arith.constant 0 : index
    %12 = vector.load %arg6[%c0_9, %c0_10, %c0_11] : memref<1x8x32xf32, #tpu.memory_space<vmem>>, vector<1x8x32xf32>
    %13 = vector.shape_cast %12 : vector<1x8x32xf32> to vector<8x32xf32>
    %14 = vector.shape_cast %11 : vector<8x32xf32> to vector<1x8x32xf32>
    tpu.vector_store %arg6[%c0_9, %c0_10, %c0_11], %14 {strides = array<i32>} : memref<1x8x32xf32, #tpu.memory_space<vmem>>, vector<1x8x32xf32>,
    %15 = arith.mulf %5, %0 : vector<8x32xf32>
    %16 = vector.extract_strided_slice %5 {offsets = [0, 16], sizes = [8, 16], strides = [1, 1]} : vector<8x32xf32> to vector<8x16xf32>
    %17 = vector.extract_strided_slice %5 {offsets = [0, 0], sizes = [8, 16], strides = [1, 1]} : vector<8x32xf32> to vector<8x16xf32>
    %18 = tpu.concatenate %16, %17 in 1 : vector<8x16xf32>, vector<8x16xf32> -> vector<8x32xf32>
    %19 = arith.mulf %18, %1 : vector<8x32xf32>
    %20 = arith.addf %15, %19 : vector<8x32xf32>
    %c0_12 = arith.constant 0 : index
    %c0_13 = arith.constant 0 : index
    %c0_14 = arith.constant 0 : index
    %21 = vector.load %arg7[%c0_12, %c0_13, %c0_14] : memref<1x8x32xf32, #tpu.memory_space<vmem>>, vector<1x8x32xf32>
    %22 = vector.shape_cast %21 : vector<1x8x32xf32> to vector<8x32xf32>
    %23 = vector.shape_cast %20 : vector<8x32xf32> to vector<1x8x32xf32>
    tpu.vector_store %arg7[%c0_12, %c0_13, %c0_14], %23 {strides = array<i32>} : memref<1x8x32xf32, #tpu.memory_space<vmem>>, vector<1x8x32xf32>,
    return
  }
  func.func @transform_0(%arg0: i32, %arg1: i32) -> (i32, i32, i32) {
    %c0_i32 = arith.constant 0 : i32
    %c0_i32_0 = arith.constant 0 : i32
    return %arg1, %arg0, %c0_i32 : i32, i32, i32
  }
  func.func @transform_1(%arg0: i32, %arg1: i32) -> (i32, i32, i32) {
    %c0_i32 = arith.constant 0 : i32
    %c0_i32_0 = arith.constant 0 : i32
    return %arg1, %arg0, %c0_i32 : i32, i32, i32
  }
  func.func @transform_2(%arg0: i32, %arg1: i32) -> (i32, i32) {
    %c0_i32 = arith.constant 0 : i32
    %c0_i32_0 = arith.constant 0 : i32
    return %arg0, %c0_i32 : i32, i32
  }
  func.func @transform_3(%arg0: i32, %arg1: i32) -> (i32, i32) {
    %c0_i32 = arith.constant 0 : i32
    %c0_i32_0 = arith.constant 0 : i32
    return %arg0, %c0_i32 : i32, i32
  }
  func.func @transform_4(%arg0: i32, %arg1: i32) -> (i32, i32, i32) {
    %c0_i32 = arith.constant 0 : i32
    %c0_i32_0 = arith.constant 0 : i32
    return %arg1, %arg0, %c0_i32 : i32, i32, i32
  }
  func.func @transform_5(%arg0: i32, %arg1: i32) -> (i32, i32, i32) {
    %c0_i32 = arith.constant 0 : i32
    %c0_i32_0 = arith.constant 0 : i32
    return %arg1, %arg0, %c0_i32 : i32, i32, i32
  }
}

</mosaic_0001>

<bundles_post_ra>
// kernel: tpu_custom_call.1
= control target key start
LH: loop header
LB: loop body
LE: loop exit
PB: predicated region body
PF: predicated region fallthrough
CT: control target
= control target key end

     0   :  { %s1213_s0 = inlined_call_operand.hbm [shape: f32[8,8,32], index: 0, kind: input, shape index: {}]   ;;  %s1214_s1 = inlined_call_operand.hbm [shape: f32[8,8,32], index: 1, kind: input, shape index: {}]   ;;  %s1215_s2 = inlined_call_operand.hbm [shape: f32[8,32], index: 2, kind: input, shape index: {}]   ;;  %s1216_s3 = inlined_call_operand.vmem [shape: f32[8,32], index: 3, kind: input, shape index: {}]   ;;  %s1217_s4 = inlined_call_operand.hbm [shape: f32[8,8,32], index: 4, kind: output, shape index: {0}]   ;;  %s1218_s5 = inlined_call_operand.hbm [shape: f32[8,8,32], index: 5, kind: output, shape index: {1}]  }
   0x1   :  { %1225 = sst [smem:[#allocation19_spill]] %s1215_s2 }
   0x2   :  { %11 = vsyncpa [#allocation3], 0 }
   0x3   :  { %13 = vsyncpa [#allocation3 + $0x1], 0 }
   0x4   :  { %14 = vsyncpa [#allocation6], 0 }
   0x5   :  { %16 = vsyncpa [#allocation6 + $0x1], 0 }
   0x6   :  { %17 = vsyncpa [#allocation4], 0 }
   0x7   :  { %19 = vsyncpa [#allocation4 + $0x1], 0 }
   0x8   :  { %20 = vsyncpa [#allocation10], 0 }
   0x9   :  { %22 = vsyncpa [#allocation10 + $0x1], 0  ;;  %s929_s18 = smov 0   ;;  %s931_s19 = smov 0  }
   0xa   :  { %s933_s20 = smov 0   ;;  %s935_s21 = smov 0  }
   0xb   :  { %s937_s22 = smov 0   ;;  %s939_s23 = smov 0  }
   0xc LB: > { %1226 = sst [smem:[#allocation16_spill]] %s886_s22  ;;  %s960_s24 = sadd.s32 4294967295, %s890_s23   ;;  %s890_s23 = sphi %s939_s23, %s28_s23   ;;  %s886_s22 = sphi %s937_s22, %s1247_s22   ;;  %s882_s21 = sphi %s935_s21, %s1246_s21   ;;  %s878_s20 = sphi %s933_s20, %s1250_s20   ;;  %s874_s19 = sphi %s931_s19, %s1249_s19   ;;  %s870_s18 = sphi %s929_s18, %s1248_s18  }
   0xd   : > { %s574_s25 = sadd.s32 4294967294, %s890_s23   ;;  %p62_p0 = scmp.ne.s32.totalorder %s874_s19, %s870_s18 }
   0xe   : > { %p1219_p1 = scmp.eq.s32.totalorder %s960_s24, 0  ;;  %p174_p3 = scmp.eq.s32.totalorder %s574_s25, 7 }
   0xf   : > { %p575_p5 = scmp.ge.s32.totalorder %s890_s23, 1  ;;  %p209_p7 = scmp.lt.s32.totalorder %s890_s23, 9 }
  0x10   : > { %p969_p4 = por %p1219_p1, %p62_p0  ;;  %p974_p6 = por %p174_p3, %p62_p0 }
  0x11   : > { %p979_p8 = pnand %p575_p5, %p209_p7  ;;  %s892_s29 = smov [#allocation7]  }
  0x12   : > { %s1227_s26 = scalar_select %p969_p4, 1, 0 }
  0x13   : > { %s1228_s27 = scalar_select %p974_p6, 1, 0 }
  0x14   : > { %s1229_s28 = scalar_select %p979_p8, 1, 0 }
  0x15   : > { %s224_s30 = sshll.u32 %s892_s29, 4  ;;  %p607_p9 = pneg %p979_p8  ;;  %s225_s30 = int_to_ptr.vmem [resolvable:$true] %s224_s30 }
  0x16   : > { %s37_s7 = sadd.s32 1, %s886_s22  ;;  %s49_s8 = sadd.s32 1, %s878_s20 }
  0x17   : > { %p987_p10 = pnand %p607_p9, %p1219_p1  ;;  %p993_p11 = scmp.ge.s32.totalorder %s37_s7, 8 }
  0x18   : > { %s1232_s2 = sld [smem:[#allocation19_spill]] }
  0x19   : > { %s1231_s9 = scalar_select %p993_p11, 1, 0 }
  0x1a   : > { %p682_p13 = pneg %p987_p10 }
  0x1e   : > { %s680_s12 = scalar_lea.hbm %s1232_s2, 128 }
  0x1f   : > { %p681_p12 = scmp.ne.s32.totalorder %s1232_s2, %s680_s12  ;;  %p687_p5 = scmp.lt.u32.totalorder %s680_s12, %s1232_s2 }
  0x21   : > { %p683_p0 = pnand %p682_p13, %p681_p12 }
  0x23   : > { %p684_p3 = pneg %p683_p0 }
  0x25   : > { %p689_p7 = pnand %p687_p5, %p684_p3 }
  0x27   : > { %692 = shalt.err (!%p689_p7)
}
  0x28   : > { %s693_s17 = scalar_lea.vmem %s225_s30, 128  ;;  %p701_p6 = scmp.lt.s32.totalorder %s225_s30, %s225_s30 }
  0x29   : > { %p694_p9 = scmp.ne.s32.totalorder %s225_s30, %s693_s17  ;;  %p702_p4 = scmp.lt.s32.totalorder %s693_s17, %s693_s17 }
  0x2b   : > { %p696_p1 = pnand %p694_p9, %p682_p13  ;;  %p703_p8 = por %p702_p4, %p701_p6 }
  0x2d   : > { %p697_p2 = pneg %p696_p1 }
  0x2f   : > { %p704_p11 = pnand %p703_p8, %p697_p2 }
  0x31   : > { %707 = shalt.err (!%p704_p11)
}
  0x32   : > { %610 = dma.hbm_to_vmem [thread:$0]  (!%p987_p10), %s1232_s2, 128, %s225_s30, [#allocation6]  }
  0x33   : > { %p1233_p1 = scmp.ne.s32.totalorder %s1231_s9, 0  ;;  %p56_p2 = scmp.ne.s32.totalorder %s878_s20, %s874_s19 }
  0x34   : > { %p57_p4 = scmp.eq.s32.totalorder %s890_s23, 0  ;;  %p626_p6 = scmp.lt.s32.totalorder %s890_s23, 8 }
  0x35   : > { %s1252_s7 = smov (%p1233_p1, %s37_s7), 0  ;;  %p1235_p12 = scmp.eq.s32.totalorder %s960_s24, 7 }
  0x36   : > { %1234 = sst [smem:[#allocation17_spill]] %s1252_s7  ;;  %s44_s6 = ssub.s32 %s886_s22, %s1252_s7 }
  0x37   : > { %p47_p8 = scmp.eq.s32.totalorder %s44_s6, 0  ;;  %p58_p11 = por %p57_p4, %p56_p2 }
  0x38   : > { %p1025_p13 = por %p1235_p12, %p56_p2  ;;  %s242_s11 = sand.u32 1, %s878_s20  }
  0x39   : > { %s1033_s12 = scalar_select %p47_p8, %s878_s20, %s49_s8  }
  0x3a   : > { %s1236_s10 = scalar_select %p1025_p13, 1, 0 }
  0x3b   : > { %1237 = sst [smem:[#allocation18_spill]] %s1033_s12  ;;  %s1035_s30 = sshll.u32 %s242_s11, 3 }
  0x3c   : > { %s580_s9 = sshll.u32 %s886_s22, 7  ;;  %s246_s16 = scalar_lea.vmem [#allocation2], %s1035_s30 }
  0x3d   : > { %s1041_s15 = scalar_lea.hbm %s1213_s0, %s580_s9  ;;  %s254_s17 = sshll.u32 %s246_s16, 4  ;;  %s1044_s17 = int_to_ptr.vmem [resolvable:$true] %s254_s17 }
  0x3e   : > { %p1046_p10 = pnand %p626_p6, %p58_p11  ;;  %s1053_s6 = scalar_lea.hbm %s1214_s1, %s580_s9 }
  0x3f   : > { %s261_s13 = sand.u32 1, %s890_s23   ;;  %s243_s14 = scalar_lea.sflag [#allocation3], %s242_s11 }
  0x40   : > { %s708_s2 = scalar_lea.hbm %s1041_s15, 128  ;;  %p710_p3 = pneg %p1046_p10 }
  0x41   : > { %p709_p0 = scmp.ne.s32.totalorder %s1041_s15, %s708_s2  ;;  %s713_s22 = scalar_lea.hbm %s1213_s0, 1024 }
  0x42   : > { %p714_p9 = scmp.lt.u32.totalorder %s1041_s15, %s1213_s0  ;;  %p715_p1 = scmp.lt.u32.totalorder %s713_s22, %s708_s2 }
  0x43   : > { %p711_p5 = pnand %p710_p3, %p709_p0  ;;  %p717_p4 = scmp.lt.u32.totalorder %s708_s2, %s1041_s15 }
  0x44   : > { %p716_p2 = por %p715_p1, %p714_p9 }
  0x45   : > { %p712_p7 = pneg %p711_p5 }
  0x46   : > { %p718_p6 = por %p717_p4, %p716_p2 }
  0x48   : > { %p719_p8 = pnand %p718_p6, %p712_p7 }
  0x4a   : > { %722 = shalt.err (!%p719_p8)
}
  0x4b   : > { %s723_s11 = scalar_lea.vmem %s1044_s17, 128  ;;  %s893_s7 = smov [#allocation2]  }
  0x4c   : > { %p724_p11 = scmp.ne.s32.totalorder %s1044_s17, %s723_s11  ;;  %s728_s9 = sshll.u32 %s893_s7, 4  ;;  %s729_s9 = int_to_ptr.vmem [resolvable:$false] %s728_s9 }
  0x4d   : > { %s730_s12 = scalar_lea.vmem %s729_s9, 256  ;;  %p731_p5 = scmp.lt.s32.totalorder %s1044_s17, %s729_s9 }
  0x4e   : > { %p726_p12 = pnand %p724_p11, %p710_p3  ;;  %p732_p9 = scmp.lt.s32.totalorder %s730_s12, %s723_s11 }
  0x50   : > { %p727_p0 = pneg %p726_p12  ;;  %p733_p1 = por %p732_p9, %p731_p5 }
  0x52   : > { %p734_p2 = pnand %p733_p1, %p727_p0 }
  0x54   : > { %737 = shalt.err (!%p734_p2)
}
  0x55   : > { %614 = dma.hbm_to_vmem [thread:$0]  (!%p1046_p10), %s1041_s15, 128, %s1044_s17, %s243_s14  }
  0x56   : > { %s265_s2 = scalar_lea.vmem [#allocation5], %s1035_s30  ;;  %s262_s29 = scalar_lea.sflag [#allocation6], %s261_s13 }
  0x57   : > { %s273_s22 = sshll.u32 %s265_s2, 4  ;;  %s738_s16 = scalar_lea.hbm %s1053_s6, 128  ;;  %s274_s22 = int_to_ptr.vmem [resolvable:$true] %s273_s22 }
  0x58   : > { %p739_p7 = scmp.ne.s32.totalorder %s1053_s6, %s738_s16  ;;  %s743_s7 = scalar_lea.hbm %s1214_s1, 1024 }
  0x59   : > { %p744_p8 = scmp.lt.u32.totalorder %s1053_s6, %s1214_s1  ;;  %p745_p11 = scmp.lt.u32.totalorder %s743_s7, %s738_s16 }
  0x5a   : > { %p741_p4 = pnand %p739_p7, %p710_p3  ;;  %p747_p0 = scmp.lt.u32.totalorder %s738_s16, %s1053_s6 }
  0x5b   : > { %p746_p12 = por %p745_p11, %p744_p8 }
  0x5c   : > { %p742_p6 = pneg %p741_p4 }
  0x5d   : > { %p748_p5 = por %p747_p0, %p746_p12 }
  0x5f   : > { %p749_p9 = pnand %p748_p5, %p742_p6 }
  0x61   : > { %752 = shalt.err (!%p749_p9)
}
  0x62   : > { %s753_s30 = scalar_lea.vmem %s274_s22, 128  ;;  %s894_s15 = smov [#allocation5]  }
  0x63   : > { %p754_p1 = scmp.ne.s32.totalorder %s274_s22, %s753_s30  ;;  %s758_s17 = sshll.u32 %s894_s15, 4  ;;  %s759_s17 = int_to_ptr.vmem [resolvable:$false] %s758_s17 }
  0x64   : > { %s760_s13 = scalar_lea.vmem %s759_s17, 256  ;;  %p761_p4 = scmp.lt.s32.totalorder %s274_s22, %s759_s17 }
  0x65   : > { %p756_p2 = pnand %p754_p1, %p710_p3  ;;  %p762_p13 = scmp.lt.s32.totalorder %s760_s13, %s753_s30 }
  0x67   : > { %p757_p7 = pneg %p756_p2  ;;  %p763_p8 = por %p762_p13, %p761_p4 }
  0x69   : > { %p764_p11 = pnand %p763_p8, %p757_p7 }
  0x6b   : > { %767 = shalt.err (!%p764_p11)
}
  0x6c   : > { %617 = dma.hbm_to_vmem [thread:$0]  (!%p1046_p10), %s1053_s6, 128, %s274_s22, %s262_s29  }
  0x6d   : > { %p1239_p6 = scmp.ne.s32.totalorder %s1229_s28, 0 }
  0x6e   : > { %s1106_s14 = sand.u32 (!%p1239_p6), 1, %s874_s19   ;;  %p1240_p13 = scmp.ne.s32.totalorder (!%p1239_p6), %s1227_s26, 0 }
  0x6f   : > { %282 = sbr.rel (%p1239_p6) target bundleno = 287 (0x11f), region = 36  ;;  %s1109_s2 = sshll.u32 (!%p1239_p6), %s1106_s14, 3 }
  0x70   : > { %s285_s16 = scalar_lea.sflag (!%p1239_p6), [#allocation3], %s1106_s14  ;;  %s288_s25 = scalar_lea.vmem (!%p1239_p6), [#allocation2], %s1109_s2 }
  0x76   : > { %849 = dma.done.wait (%p1240_p13), %s285_s16, 128  }
  0x77   : > { %851 = vsyncadd (%p1240_p13), %s285_s16, 4294967168  ;;  %s293_s28 = sand.u32 1, %s960_s24   ;;  %s297_s6 = scalar_lea.vmem [#allocation5], %s1109_s2 }
  0x78   : > { %s294_s8 = scalar_lea.sflag [#allocation6], %s293_s28 }
  0x79   : > { %853 = dma.done.wait (%p1240_p13), %s294_s8, 128  }
  0x7a   : > { %855 = vsyncadd (%p1240_p13), %s294_s8, 4294967168  ;;  %p1241_p10 = scmp.eq.s32.totalorder %s960_s24, 0 }
  0x7c   : > { %857 = dma.done.wait (%p1241_p10), [#allocation6], 128   ;;  %p1242_p3 = pmov %p1241_p10 }
  0x7d   : > { %v349_v0 = vld [vmem:[%s297_s6] sm:$0xff]  ;;  %v348_v1 = vld [vmem:[%s288_s25] sm:$0xff]  ;;  %s895_s22 = smov 112   ;;  %s896_s29 = smov 16   ;;  %vm358_vm0 = vcmask 130048   ;;  %vm362_vm1 = vcmask 261120  }
  0x7e   : > { %859 = vsyncadd (%p1242_p3), [#allocation6], 4294967168  ;;  %366 = vrot.lane.b32.xlu1 %v349_v0, %s895_s22  ;;  %352 = vrot.lane.b32.xlu0 %v348_v1, %s895_s22  ;;  %v346_v4 = vld [vmem:[#allocation7] sm:$0xff]  ;;  %s591_s24 = sshll.u32 %s882_s21, 7  ;;  %s334_s7 = scalar_lea.vmem [#allocation8], %s1109_s2 }
  0x7f   : > { %v347_v5 = vld [vmem:[%s1216_s3] sm:$0xff]  ;;  %v364_v6 = vmul.f32 %v349_v0, %v346_v4  ;;  %v350_v7 = vmul.f32 %v348_v1, %v346_v4  ;;  %s396_s9 = sshll.u32 %s334_s7, 4  ;;  %s341_s12 = scalar_lea.vmem [#allocation9], %s1109_s2  ;;  %s1138_s9 = int_to_ptr.vmem [resolvable:$true] %s396_s9 }
  0x80   : > { %s410_s30 = sshll.u32 %s341_s12, 4  ;;  %s1136_s13 = scalar_lea.hbm %s1217_s4, %s591_s24  ;;  %s1145_s30 = int_to_ptr.vmem [resolvable:$true] %s410_s30 }
  0x81   : > { %s1143_s25 = scalar_lea.hbm %s1218_s5, %s591_s24  ;;  %s377_s2 = scalar_lea.sflag [#allocation4], %s1106_s14 }
  0x82   : > { %369 = vrot.lane.b32.xlu1 %v349_v0, %s896_s29  ;;  %355 = vrot.lane.b32.xlu0 %v348_v1, %s896_s29  ;;  %s768_s28 = scalar_lea.vmem %s1138_s9, 128  ;;  %p1243_p0 = scmp.ne.s32.totalorder %s1236_s10, 0 }
  0x83   : > { %p769_p12 = scmp.ne.s32.totalorder %s1138_s9, %s768_s28  ;;  %s897_s8 = smov [#allocation8]  }
  0x84   : > { %s772_s6 = sshll.u32 %s897_s8, 4  ;;  %s773_s6 = int_to_ptr.vmem [resolvable:$false] %s772_s6 }
  0x85   : > { %p770_p5 = pnand %p769_p12, %p1243_p0  ;;  %s774_s22 = scalar_lea.vmem %s773_s6, 256 }
  0x86   : > { %p775_p1 = scmp.lt.s32.totalorder %s1138_s9, %s773_s6  ;;  %p776_p2 = scmp.lt.s32.totalorder %s774_s22, %s768_s28 }
  0x87   : > { %p771_p9 = pneg %p770_p5 }
  0x88   : > { %p777_p7 = por %p776_p2, %p775_p1 }
  0x8a   : > { %p778_p4 = pnand %p777_p7, %p771_p9 }
  0xf0   : > { %v367_v2 = vpop.permute.xlu1 %366  ;;  %v353_v3 = vpop.permute.xlu0 %352 }
  0xf4   : > { %v370_v8 = vpop.permute.xlu1 %369  ;;  %v356_v9 = vpop.permute.xlu0 %355 }
  0xf5   : > { %v372_v10 = vsel %vm358_vm0, %v367_v2, %v370_v8  ;;  %v359_v11 = vsel %vm358_vm0, %v353_v3, %v356_v9 }
  0xf6   : > { %v373_v12 = vmul.f32 %v372_v10, %v347_v5  ;;  %v360_v13 = vmul.f32 %v359_v11, %v347_v5 }
  0xf8   : > { %v374_v14 = vadd.f32 %v373_v12, %v364_v6  ;;  %v361_v15 = vadd.f32 %v360_v13, %v350_v7 }
  0xfa   : > { %363 = vst.msk [vmem:[%s334_s7] sm:$0xff] %vm362_vm1, %v361_v15  ;;  %375 = vst.msk [vmem:[%s341_s12] sm:$0xff] %vm362_vm1, %v374_v14 }
  0xfb   : > { %781 = shalt.err (!%p778_p4)
}
  0xfc   : > { %s782_s29 = scalar_lea.hbm %s1136_s13, 128  ;;  %s786_s24 = scalar_lea.hbm %s1217_s4, 1024 }
  0xfd   : > { %p783_p8 = scmp.ne.s32.totalorder %s1136_s13, %s782_s29  ;;  %p787_p13 = scmp.lt.u32.totalorder %s1136_s13, %s1217_s4 }
  0xfe   : > { %p788_p10 = scmp.lt.u32.totalorder %s786_s24, %s782_s29  ;;  %p790_p12 = scmp.lt.u32.totalorder %s782_s29, %s1136_s13 }
  0xff   : > { %p784_p11 = pnand %p783_p8, %p1243_p0 }
 0x100   : > { %p789_p3 = por %p788_p10, %p787_p13 }
 0x101   : > { %p785_p6 = pneg %p784_p11 }
 0x102   : > { %p791_p5 = por %p790_p12, %p789_p3 }
 0x104   : > { %p792_p9 = pnand %p791_p5, %p785_p6 }
 0x106   : > { %795 = shalt.err (!%p792_p9)
}
 0x107   : > { %603 = dma.vmem_to_hbm [thread:$0]  (%p1243_p0), %s1138_s9, 128, %s1136_s13, %s377_s2  }
 0x108   : > { %s382_s15 = scalar_lea.sflag [#allocation10], %s1106_s14  ;;  %s796_s17 = scalar_lea.vmem %s1145_s30, 128 }
 0x109   : > { %p797_p1 = scmp.ne.s32.totalorder %s1145_s30, %s796_s17  ;;  %s898_s21 = smov [#allocation9]  }
 0x10a   : > { %s800_s16 = sshll.u32 %s898_s21, 4  ;;  %s801_s16 = int_to_ptr.vmem [resolvable:$false] %s800_s16 }
 0x10b   : > { %p798_p2 = pnand %p797_p1, %p1243_p0  ;;  %s802_s28 = scalar_lea.vmem %s801_s16, 256 }
 0x10c   : > { %p803_p4 = scmp.lt.s32.totalorder %s1145_s30, %s801_s16  ;;  %p804_p8 = scmp.lt.s32.totalorder %s802_s28, %s796_s17 }
 0x10d   : > { %p799_p7 = pneg %p798_p2 }
 0x10e   : > { %p805_p11 = por %p804_p8, %p803_p4 }
 0x110   : > { %p806_p6 = pnand %p805_p11, %p799_p7 }
 0x112   : > { %809 = shalt.err (!%p806_p6)
}
 0x113   : > { %s810_s14 = scalar_lea.hbm %s1143_s25, 128  ;;  %s814_s2 = scalar_lea.hbm %s1218_s5, 1024 }
 0x114   : > { %p811_p13 = scmp.ne.s32.totalorder %s1143_s25, %s810_s14  ;;  %p815_p12 = scmp.lt.u32.totalorder %s1143_s25, %s1218_s5 }
 0x115   : > { %p816_p5 = scmp.lt.u32.totalorder %s814_s2, %s810_s14  ;;  %p818_p1 = scmp.lt.u32.totalorder %s810_s14, %s1143_s25 }
 0x116   : > { %p812_p10 = pnand %p811_p13, %p1243_p0 }
 0x117   : > { %p817_p9 = por %p816_p5, %p815_p12 }
 0x118   : > { %p813_p3 = pneg %p812_p10 }
 0x119   : > { %p819_p2 = por %p818_p1, %p817_p9 }
 0x11b   : > { %p820_p7 = pnand %p819_p2, %p813_p3 }
 0x11d   : > { %823 = shalt.err (!%p820_p7)
}
 0x11e   : > { %604 = dma.vmem_to_hbm [thread:$0]  (%p1243_p0), %s1145_s30, 128, %s1143_s25, %s382_s15  }
 0x11f PF: > { %p628_p4 = scmp.ge.s32.totalorder %s890_s23, 2  ;;  %s422_s22 = sand.u32 1, %s870_s18  }
 0x120   : > { %p1244_p8 = scmp.ne.s32.totalorder %s1228_s27, 0  ;;  %s423_s29 = scalar_lea.sflag [#allocation4], %s422_s22 }
 0x122   : > { %p619_p11 = pnand %p628_p4, %p1244_p8 }
 0x124   : > { %861 = dma.done.wait (!%p619_p11), %s423_s29, 128  }
 0x125   : > { %863 = vsyncadd (!%p619_p11), %s423_s29, 4294967168  ;;  %s432_s26 = scalar_lea.sflag [#allocation10], %s422_s22 }
 0x126   : > { %865 = dma.done.wait (!%p619_p11), %s432_s26, 128  }
 0x127   : > { %867 = vsyncadd (!%p619_p11), %s432_s26, 4294967168  ;;  %s28_s23 = sadd.s32 1, %s890_s23   ;;  %s1245_s10 = sld [smem:[#allocation18_spill]] }
 0x128   : > { %p25_p6 = scmp.ge.s32.totalorder %s28_s23, 10   ;;  %s1246_s21 = sld [smem:[#allocation16_spill]] }
 0x129   : > { %s1247_s22 = sld [smem:[#allocation17_spill]]  ;;  %s1248_s18 = smov %s874_s19 }
 0x12a   : > { %s1249_s19 = smov %s878_s20  ;;  %27 = sbr.rel (!%p25_p6) target bundleno = 12 (0xc), region = 119 }
 0x12d   : > { %s1250_s20 = smov %s1245_s10 }
 0x131   :  { %437 = vsyncpa [#allocation3], 1 }
 0x132   :  { %439 = vsyncpa [#allocation3 + $0x1], 1 }
 0x133   :  { %440 = vsyncpa [#allocation6], 1 }
 0x134   :  { %442 = vsyncpa [#allocation6 + $0x1], 1 }
 0x135   :  { %443 = vsyncpa [#allocation4], 1 }
 0x136   :  { %445 = vsyncpa [#allocation4 + $0x1], 1 }
 0x137   :  { %446 = vsyncpa [#allocation10], 1 }
 0x138   :  { %448 = vsyncpa [#allocation10 + $0x1], 1 }

</bundles_post_ra>
